<compile_context>
chip_gen: v7x
topology: tpu7x:2x2x1
jax: 0.10.0
libtpu: 0.0.40
codegen_flags: <defaults>
</compile_context>

<pallas_src>
import functools

import jax
import jax.numpy as jnp
from jax.experimental import pallas as pl
from jax.experimental.pallas import tpu as pltpu


def _masked_nll_kernel(inp_ref, tgt_ref, out_ref, *, group, num_c_tiles):
    """Row-tile i (parallel), class-tile j (arbitrary, innermost; usually only 1).

    inp_ref : (TN, TC) log-probs (native dtype) for this (row, class) tile
    tgt_ref : (TN, G)  int32 folded target lane(s); -1 means "masked / padded, ignore"
    out_ref : (1, TC)  float32 per-row-tile partial sums
    """
    x = inp_ref[...]                                      # (TN, TC)
    tgt = tgt_ref[...]                                    # (TN, G) int32
    tn, tc = x.shape

    lane = jax.lax.broadcasted_iota(jnp.int32, (tn, tc), 1)
    if num_c_tiles > 1:
        # Shift the (TN, G) targets into this class tile's lane frame (cheap: G << TC).
        tgt = tgt - pl.program_id(1) * tc

    # Fused gather + mask: a row contributes exactly its selected log-prob iff one of its
    # folded targets matches this lane. -1 (masked rows, host-padded rows) never matches any
    # lane, so garbage from ragged last-tile inp reads is selected away.
    pred = lane == tgt[:, 0:1]
    for k in range(1, group):
        pred = pred | (lane == tgt[:, k : k + 1])
    contrib = jnp.where(pred, x.astype(jnp.float32), jnp.float32(0.0))
    tile_sum = jnp.sum(contrib, axis=0, keepdims=True)    # (1, TC): sublane reduce only;
    # cross-lane reduce + divide are deferred to the wrapper.

    if num_c_tiles == 1:
        out_ref[...] = tile_sum                           # common case: single direct store
    else:
        j = pl.program_id(1)

        @pl.when(j == 0)
        def _():
            out_ref[...] = tile_sum

        @pl.when(j > 0)
        def _():
            out_ref[...] += tile_sum


def masked_nll_loss(
    inp,
    target,
    mask,
    *,
    vmem_block_budget_bytes=16 * 1024 * 1024,  # double-buffered inp + target blocks
    c_tile_cap=2048,                           # class-tile width for vocab-scale C (mult of 128)
    row_tile_cap=1024,                         # cap row tiles -> always several grid steps
    min_row_tiles=8,                           # target >= this many row tiles when N allows
):
    """inp: (N, C) log-probs, target: (N, 1) int, mask: (N, 1) bool -> scalar float32 loss."""
    N, C = inp.shape
    target = target.reshape(N, 1).astype(jnp.int32)
    mask = mask.reshape(N, 1).astype(jnp.bool_)
    den = jnp.sum(mask.astype(jnp.float32))

    itemsize = jnp.dtype(inp.dtype).itemsize
    sub = max(8, 32 // itemsize)               # min sublane tile: 8 (f32), 16 (bf16), 32 (8-bit)

    # ---- layout selection ---------------------------------------------------------------
    group = 128 // C if (0 < C < 128 and 128 % C == 0) else 0
    if group > 1 and N % group == 0:
        # Lane-dense small-C path: pack g original rows per 128-lane row (row-major view) and
        # fold the target into the packed lane coordinate k*C + t (or -1 when masked).
        rows = N // group
        inp_k = inp.reshape(rows, 128)
        r = jnp.arange(N, dtype=jnp.int32).reshape(N, 1)
        folded = jnp.where(mask, (r % group) * C + target, jnp.int32(-1))
        tgt_k = folded.reshape(rows, group)
        tile_c, num_c = 128, 1
    else:
        # General path: stream (N, C) as-is; fold the mask to target = -1.
        rows, group = N, 1
        inp_k = inp
        tgt_k = jnp.where(mask, target, jnp.int32(-1))
        tile_c = C if C <= c_tile_cap else c_tile_cap
        num_c = pl.cdiv(C, tile_c)

    # ---- generation-aware VMEM limit ------------------------------------------------------
    try:
        vmem_cap = int(pltpu.get_tpu_info().vmem_capacity_bytes)
    except Exception:
        vmem_cap = 64 * 1024 * 1024            # conservative fallback (v7x physical)
    vmem_limit_bytes = int(0.65 * vmem_cap)    # ~83 MiB on v5e/v6e, ~41 MiB on v7x
    budget = min(vmem_block_budget_bytes,
                 max(vmem_limit_bytes - 8 * 1024 * 1024, 4 * 1024 * 1024))

    # ---- row-axis tiling -------------------------------------------------------------------
    # Bytes per row of a tile: double-buffered (inp lanes * itemsize + 128-lane-padded i32 tgt).
    bytes_per_row = 2 * (tile_c * itemsize + 128 * 4)
    rows_rounded = ((rows + sub - 1) // sub) * sub
    tile_n = budget // bytes_per_row
    # Keep several row tiles: pipelining (DMA/compute overlap) + v7x dual-TC sharding.
    tile_n = min(tile_n, row_tile_cap, pl.cdiv(rows_rounded, min_row_tiles))
    tile_n = max(sub, (tile_n // sub) * sub)
    if tile_n >= rows:
        tile_n = rows                          # single full-extent block (always layout-legal)
    num_rows = pl.cdiv(rows, tile_n)

    # Pad targets so no target block ever reads OOB (replaces the in-kernel row guard).
    pad_rows = num_rows * tile_n - rows
    if pad_rows:
        tgt_k = jnp.pad(tgt_k, ((0, pad_rows), (0, 0)), constant_values=-1)

    kernel = functools.partial(_masked_nll_kernel, group=group, num_c_tiles=num_c)

    partials = pl.pallas_call(
        kernel,
        out_shape=jax.ShapeDtypeStruct((num_rows, 1, tile_c), jnp.float32),
        grid_spec=pltpu.PrefetchScalarGridSpec(
            num_scalar_prefetch=0,
            grid=(num_rows, num_c),
            in_specs=[
                pl.BlockSpec((tile_n, tile_c), lambda i, j: (i, j)),
                pl.BlockSpec((tile_n, group), lambda i, j: (i, 0)),
            ],
            # One lane-vector partial per row tile; squeezed leading dim, resident across j.
            out_specs=pl.BlockSpec((None, 1, tile_c), lambda i, j: (i, 0, 0)),
        ),
        compiler_params=pltpu.CompilerParams(
            # Row tiles are independent ("parallel": both v7x TCs take row tiles);
            # the class axis (if >1) accumulates into the same output block ("arbitrary").
            dimension_semantics=("parallel", "arbitrary"),
            vmem_limit_bytes=vmem_limit_bytes,
        ),
    )(inp_k, tgt_k)

    num = jnp.sum(partials)                    # sum of selected log-probs over unmasked rows
    # NOTE: all-False mask divides by zero (inf/nan), matching the PyTorch module.
    return -num / den


if __name__ == "__main__":
    key = jax.random.PRNGKey(0)

    def reference(inp, target, mask):
        sel = jnp.take_along_axis(inp, target, axis=1)
        m = mask.astype(jnp.float32)
        return -jnp.sum(sel * m) / jnp.sum(m)

    # (name, N, C, extra kwargs) — exercises the packed small-C path, the general single
    # class-tile path, and the multi class-tile accumulation path.
    cases = [
        ("packed_small_C", 16, 32, {}),
        ("general_single_tile", 16, 48, {}),
        ("general_multi_tile", 16, 300, {"c_tile_cap": 128}),
    ]

    for idx, (name, N, C, kw) in enumerate(cases):
        k1, k2, k3 = jax.random.split(jax.random.fold_in(key, idx), 3)
        logits = jax.random.normal(k1, (N, C), dtype=jnp.float32)
        inp = jax.nn.log_softmax(logits, axis=1)                        # (N, C) log-probs
        target = jax.random.randint(k2, (N, 1), 0, C, dtype=jnp.int32)  # (N, 1)
        mask = jax.random.bernoulli(k3, 0.7, (N, 1))                    # (N, 1) bool
        mask = mask.at[0, 0].set(True)                                  # ensure non-empty mask

        loss = jax.block_until_ready(masked_nll_loss(inp, target, mask, **kw))
        loss_ref = reference(inp, target, mask)
        assert jnp.allclose(loss, loss_ref, rtol=1e-5, atol=1e-5), (name, loss, loss_ref)

    print("KERNEL_OK")
</pallas_src>

<mosaic_0001>
module attributes {stable_mosaic.version = 11 : i64} {
  func.func @_masked_nll_kernel(%arg0: i32, %arg1: i32, %arg2: memref<4x128xf32, #tpu.memory_space<vmem>>, %arg3: memref<4x4xi32, #tpu.memory_space<vmem>>, %arg4: memref<1x1x128xf32, #tpu.memory_space<vmem>>) attributes {dimension_semantics = [#tpu.dimension_semantics<parallel>, #tpu.dimension_semantics<arbitrary>], iteration_bounds = array<i64: 1, 1>, scalar_prefetch = 0 : i64, scratch_operands = 0 : i64, tpu.core_type = #tpu.core_type<tc>, window_params = [{transform_indices = @transform_0, window_bounds = array<i64: 4, 128>}, {transform_indices = @transform_1, window_bounds = array<i64: 4, 4>}, {transform_indices = @transform_2, window_bounds = array<i64: 1, 1, 128>}]} {
    %c0 = arith.constant 0 : index
    %c0_0 = arith.constant 0 : index
    %0 = vector.load %arg2[%c0, %c0_0] : memref<4x128xf32, #tpu.memory_space<vmem>>, vector<4x128xf32>
    %c0_1 = arith.constant 0 : index
    %c0_2 = arith.constant 0 : index
    %1 = vector.load %arg3[%c0_1, %c0_2] : memref<4x4xi32, #tpu.memory_space<vmem>>, vector<4x4xi32>
    %2 = tpu.iota {dimensions = array<i32: 1>} : vector<4x128xi32>
    %3 = vector.extract_strided_slice %1 {offsets = [0, 0], sizes = [4, 1], strides = [1, 1]} : vector<4x4xi32> to vector<4x1xi32>
    %4 = vector.broadcast %3 : vector<4x1xi32> to vector<4x128xi32>
    %5 = arith.cmpi eq, %2, %4 : vector<4x128xi32>
    %6 = vector.extract_strided_slice %1 {offsets = [0, 1], sizes = [4, 1], strides = [1, 1]} : vector<4x4xi32> to vector<4x1xi32>
    %7 = vector.broadcast %6 : vector<4x1xi32> to vector<4x128xi32>
    %8 = arith.cmpi eq, %2, %7 : vector<4x128xi32>
    %9 = arith.ori %5, %8 : vector<4x128xi1>
    %10 = vector.extract_strided_slice %1 {offsets = [0, 2], sizes = [4, 1], strides = [1, 1]} : vector<4x4xi32> to vector<4x1xi32>
    %11 = vector.broadcast %10 : vector<4x1xi32> to vector<4x128xi32>
    %12 = arith.cmpi eq, %2, %11 : vector<4x128xi32>
    %13 = arith.ori %9, %12 : vector<4x128xi1>
    %14 = vector.extract_strided_slice %1 {offsets = [0, 3], sizes = [4, 1], strides = [1, 1]} : vector<4x4xi32> to vector<4x1xi32>
    %15 = vector.broadcast %14 : vector<4x1xi32> to vector<4x128xi32>
    %16 = arith.cmpi eq, %2, %15 : vector<4x128xi32>
    %17 = arith.ori %13, %16 : vector<4x128xi1>
    %cst = arith.constant 0.000000e+00 : f32
    %18 = vector.broadcast %cst : f32 to vector<4x128xf32>
    %19 = arith.select %17, %0, %18 : vector<4x128xi1>, vector<4x128xf32>
    %cst_3 = arith.constant dense<0.000000e+00> : vector<128xf32>
    %20 = vector.multi_reduction <add>, %19, %cst_3 [0] : vector<4x128xf32> to vector<128xf32>
    %21 = vector.shape_cast %20 : vector<128xf32> to vector<1x128xf32>
    %c0_4 = arith.constant 0 : index
    %c0_5 = arith.constant 0 : index
    %c0_6 = arith.constant 0 : index
    %22 = vector.load %arg4[%c0_4, %c0_5, %c0_6] : memref<1x1x128xf32, #tpu.memory_space<vmem>>, vector<1x1x128xf32>
    %23 = vector.shape_cast %22 : vector<1x1x128xf32> to vector<1x128xf32>
    %24 = vector.shape_cast %21 : vector<1x128xf32> to vector<1x1x128xf32>
    tpu.vector_store %arg4[%c0_4, %c0_5, %c0_6], %24 {strides = array<i32>} : memref<1x1x128xf32, #tpu.memory_space<vmem>>, vector<1x1x128xf32>,
    return
  }
  func.func @transform_0(%arg0: i32, %arg1: i32) -> (i32, i32) {
    %c0_i32 = arith.constant 0 : i32
    return %arg0, %arg1 : i32, i32
  }
  func.func @transform_1(%arg0: i32, %arg1: i32) -> (i32, i32) {
    %c0_i32 = arith.constant 0 : i32
    %c0_i32_0 = arith.constant 0 : i32
    return %arg0, %c0_i32 : i32, i32
  }
  func.func @transform_2(%arg0: i32, %arg1: i32) -> (i32, i32, i32) {
    %c0_i32 = arith.constant 0 : i32
    %c0_i32_0 = arith.constant 0 : i32
    %c0_i32_1 = arith.constant 0 : i32
    return %arg0, %c0_i32, %c0_i32_0 : i32, i32, i32
  }
}

</mosaic_0001>

<bundles_post_ra>
// kernel: tpu_custom_call.1
= control target key start
LH: loop header
LB: loop body
LE: loop exit
PB: predicated region body
PF: predicated region fallthrough
CT: control target
= control target key end

     0   :  { %7 = vsyncpa [#allocation3], 0  ;;  %s227_s0 = inlined_call_operand.hbm [shape: f32[4,128], index: 0, kind: input, shape index: {}]   ;;  %s228_s1 = inlined_call_operand.hbm [shape: s32[4,4], index: 1, kind: input, shape index: {}]   ;;  %s229_s2 = inlined_call_operand.hbm [shape: f32[1,1,128], index: 2, kind: output, shape index: {}]  }
   0x1   :  { %8 = vsyncpa [#allocation6], 0 }
   0x2   :  { %9 = vsyncpa [#allocation4], 0  ;;  %s169_s9 = smov [#allocation2]   ;;  %s170_s11 = smov [#allocation5]  }
   0x3   :  { %s16_s10 = sshll.u32 %s169_s9, 4  ;;  %s26_s12 = sshll.u32 %s170_s11, 4  ;;  %s17_s10 = int_to_ptr.vmem [resolvable:$true] %s16_s10  ;;  %s27_s12 = int_to_ptr.vmem [resolvable:$true] %s26_s12 }
   0x4   :  { %s97_s15 = scalar_lea.hbm %s227_s0, 64 }
   0x5   :  { %p98_p0 = scmp.ne.s32.totalorder %s227_s0, %s97_s15  ;;  %p101_p1 = scmp.lt.u32.totalorder %s97_s15, %s227_s0 }
   0x7   :  { %p103_p2 = pnand %p101_p1, %p98_p0 }
   0x9   :  { %106 = shalt.err (!%p103_p2)
}
   0xa   :  { %s107_s20 = scalar_lea.vmem %s17_s10, 64  ;;  %p112_p4 = scmp.lt.s32.totalorder %s17_s10, %s17_s10 }
   0xb   :  { %p108_p3 = scmp.ne.s32.totalorder %s17_s10, %s107_s20  ;;  %p113_p5 = scmp.lt.s32.totalorder %s107_s20, %s107_s20 }
   0xd   :  { %p114_p6 = por %p113_p5, %p112_p4 }
   0xf   :  { %p115_p7 = pnand %p114_p6, %p108_p3 }
  0x11   :  { %118 = shalt.err (!%p115_p7)
}
  0x12   :  { %19 = dma.hbm_to_vmem [thread:$0]  %s227_s0, 64, %s17_s10, [#allocation3]  }
  0x13   :  { %s119_s25 = scalar_lea.hbm %s228_s1, 64 }
  0x14   :  { %p120_p8 = scmp.ne.s32.totalorder %s228_s1, %s119_s25  ;;  %p123_p9 = scmp.lt.u32.totalorder %s119_s25, %s228_s1 }
  0x16   :  { %p125_p10 = pnand %p123_p9, %p120_p8 }
  0x18   :  { %128 = shalt.err (!%p125_p10)
}
  0x19   :  { %s129_s30 = scalar_lea.vmem %s27_s12, 64  ;;  %p134_p12 = scmp.lt.s32.totalorder %s27_s12, %s27_s12 }
  0x1a   :  { %p130_p11 = scmp.ne.s32.totalorder %s27_s12, %s129_s30  ;;  %p135_p13 = scmp.lt.s32.totalorder %s129_s30, %s129_s30 }
  0x1c   :  { %p136_p0 = por %p135_p13, %p134_p12 }
  0x1e   :  { %p137_p1 = pnand %p136_p0, %p130_p11 }
  0x20   :  { %140 = shalt.err (!%p137_p1)
}
  0x21   :  { %29 = dma.hbm_to_vmem [thread:$0]  %s228_s1, 64, %s27_s12, [#allocation6]  }
  0x22   :  { %163 = dma.done.wait [#allocation3], 64  }
  0x23   :  { %164 = vsyncadd [#allocation3], 4294967232 }
  0x24   :  { %165 = dma.done.wait [#allocation6], 64  }
  0x25   :  { %166 = vsyncadd [#allocation6], 4294967232  ;;  %v171_v0 = vmov 0   ;;  %v172_v1 = vmov 2   ;;  %v37_v2 = vld [vmem:[#allocation5] sm:$0xf]  ;;  %v38_v5 = vlaneseq }
  0x26   :  { %92 = vset.pattern.permute.xlu0 %v171_v0  ;;  %94 = vset.pattern.permute.xlu1 %v172_v1  ;;  %v173_v3 = vmov 1   ;;  %v174_v4 = vmov 3   ;;  %v36_v11 = vld [vmem:[#allocation2] sm:$0xf]  ;;  %vm60_vm5 = vcmask 1043456   ;;  %s175_s1 = smov [#allocation7]  }
  0x27   :  { %41 = vperm.xlu0 %92, %v37_v2   ;;  %50 = vperm.xlu1 %94, %v37_v2   ;;  %v39_v8 = vand.u32 127, %v38_v5  ;;  %s75_s4 = sshll.u32 %s175_s1, 4  ;;  %s76_s4 = int_to_ptr.vmem [resolvable:$true] %s75_s4 }
  0x28   :  { %s141_s5 = scalar_lea.vmem %s76_s4, 16  ;;  %s145_s6 = scalar_lea.vmem %s76_s4, 32 }
  0x29   :  { %p142_p2 = scmp.ne.s32.totalorder %s76_s4, %s141_s5  ;;  %p146_p3 = scmp.lt.s32.totalorder %s76_s4, %s76_s4 }
  0x2a   :  { %p147_p4 = scmp.lt.s32.totalorder %s145_s6, %s141_s5 }
  0x2b   :  { %93 = vset.pattern.permute.xlu0 %v173_v3  ;;  %95 = vset.pattern.permute.xlu1 %v174_v4 }
  0x2c   :  { %45 = vperm.xlu0 %93, %v37_v2   ;;  %55 = vperm.xlu1 %95, %v37_v2   ;;  %p148_p5 = por %p147_p4, %p146_p3 }
  0x2e   :  { %p149_p6 = pnand %p148_p5, %p142_p2 }
  0x30   :  { %96 = vset.pattern.permute.xlu0 %v174_v4 }
  0xa6   :  { %v42_v6 = vpop.permute.xlu0 %41  ;;  %v51_v7 = vpop.permute.xlu1 %50 }
  0xa7   :  { %vm43_vm0 = vcmp.eq.s32.totalorder %v39_v8, %v42_v6  ;;  %vm52_vm3 = vcmp.eq.s32.totalorder %v39_v8, %v51_v7 }
  0xab   :  { %v46_v9 = vpop.permute.xlu0 %45  ;;  %v56_v10 = vpop.permute.xlu1 %55 }
  0xac   :  { %vm47_vm1 = vcmp.eq.s32.totalorder %v39_v8, %v46_v9  ;;  %vm57_vm2 = vcmp.eq.s32.totalorder %v39_v8, %v56_v10 }
  0xad   :  { %vm48_vm4 = vmor %vm43_vm0, %vm47_vm1 }
  0xae   :  { %vm53_vm6 = vmor %vm48_vm4, %vm52_vm3 }
  0xaf   :  { %vm58_vm7 = vmor %vm53_vm6, %vm57_vm2 }
  0xb0   :  { %v59_v12 = vsel %vm58_vm7, %v36_v11, 0.0 }
  0xb1   :  { %v61_v13 = vsel %vm60_vm5, %v59_v12, 0.0 }
  0xb2   :  { %v62_v14 = vrot.slane %v61_v13, 4 }
  0xb4   :  { %v63_v15 = vadd.f32 %v62_v14, %v61_v13 }
  0xb6   :  { %v64_v16 = vrot.slane %v63_v15, 2 }
  0xb8   :  { %v65_v17 = vadd.f32 %v64_v16, %v63_v15 }
  0xba   :  { %v66_v18 = vrot.slane %v65_v17, 1 }
  0xbc   :  { %v67_v19 = vadd.f32 %v66_v18, %v65_v17 }
  0xbe   :  { %68 = vst [vmem:[#allocation7] sm:$0x1] %v67_v19 }
  0xbf   :  { %152 = shalt.err (!%p149_p6)
}
  0xc0   :  { %s153_s9 = scalar_lea.hbm %s229_s2, 16 }
  0xc1   :  { %p154_p7 = scmp.ne.s32.totalorder %s229_s2, %s153_s9  ;;  %p157_p8 = scmp.lt.u32.totalorder %s153_s9, %s229_s2 }
  0xc3   :  { %p159_p9 = pnand %p157_p8, %p154_p7 }
  0xc5   :  { %162 = shalt.err (!%p159_p9)
}
  0xc6   :  { %78 = dma.vmem_to_hbm [thread:$0]  %s76_s4, 16, %s229_s2, [#allocation4]  }
  0xc7   :  { %167 = dma.done.wait [#allocation4], 16  }
  0xc8   :  { %168 = vsyncadd [#allocation4], 4294967280 }
  0xc9   :  { %82 = vsyncpa [#allocation3], 1 }
  0xca   :  { %83 = vsyncpa [#allocation6], 1 }
  0xcb   :  { %84 = vsyncpa [#allocation4], 1 }

</bundles_post_ra>
